<compile_context>
chip_gen: v7x
topology: tpu7x:2x2x1
jax: 0.10.0
libtpu: 0.0.40
codegen_flags: <defaults>
</compile_context>

<pallas_src>
import functools

import jax
import jax.numpy as jnp
from jax import lax
from jax.experimental import pallas as pl
from jax.experimental.pallas import tpu as pltpu


def _fwd_kernel(x_ref, v_ref, p_ref, y_ref, stats_ref, scale_scr, colsum_scr,
                *, batch, momentum):
    """Pass 1: y = x @ (g * v / ||v||)^T + b_linear, streamed over batch tiles."""
    i = pl.program_id(0)
    tile_b = x_ref.shape[0]
    k = x_ref.shape[1]

    # Hoisted once: per-output-feature scale g / ||v||, kept lane-dense (1, N).
    @pl.when(i == 0)
    def _init():
        vf = v_ref[...].astype(jnp.float32)                        # (N, K)
        # sum_k v[n, k]^2 as a lane-dense (1, N) row via a ones-matmul (MXU),
        # avoiding any in-kernel transpose.
        sumsq8 = lax.dot_general(
            jnp.ones((8, k), jnp.float32), vf * vf,
            (((1,), (1,)), ((), ())),
            preferred_element_type=jnp.float32)                    # (8, N)
        g = p_ref[0:1, :]                                          # (1, N)
        scale_scr[...] = g * lax.rsqrt(sumsq8[0:1, :])
        colsum_scr[...] = jnp.zeros_like(colsum_scr)

    # MXU contraction against the resident (N, K) weight block (native dtype,
    # f32 accumulation); weight-norm scaling folded onto the (tile_b, N) output.
    t = lax.dot_general(
        x_ref[...], v_ref[...],
        (((1,), (1,)), ((), ())),
        preferred_element_type=jnp.float32)                        # (tile_b, N)
    y = t * scale_scr[...] + p_ref[1:2, :]                         # + b_linear
    y_ref[...] = y.astype(y_ref.dtype)

    # Column-sum accumulation; mask rows past the true batch size so a partial
    # last tile does not corrupt the mean.
    row = lax.broadcasted_iota(jnp.int32, (tile_b, 1), 0) + i * tile_b
    colsum_scr[...] += jnp.sum(jnp.where(row < batch, y, 0.0),
                               axis=0, keepdims=True)

    @pl.when(i == pl.num_programs(0) - 1)
    def _finalize():
        avg = colsum_scr[...] * (1.0 / batch)                      # (1, N)
        rm = p_ref[3:4, :]
        bias = p_ref[2:3, :]
        stats_ref[0:1, :] = (1.0 - momentum) * rm + momentum * avg  # new rm
        stats_ref[1:2, :] = bias - avg                              # shift


def _center_kernel(y_ref, stats_ref, out_ref):
    """Pass 2: out = y + (bias - avg), embarrassingly parallel over batch tiles."""
    shift = stats_ref[1:2, :]                                      # (1, N) f32
    out_ref[...] = (y_ref[...].astype(jnp.float32) + shift).astype(out_ref.dtype)


def _pick_batch_tile(batch, k, n, x_bytes, y_bytes):
    """Batch tile: full batch when small, else 8-aligned tile sized to stay
    well under the default scoped-VMEM budget (double-buffered x & y tiles plus
    the resident weight block)."""
    if batch <= 512:
        return batch
    budget = 24 * 1024 * 1024 - 2 * n * k * 4
    per_row = 2 * (k * x_bytes + n * max(y_bytes, 4))
    tb = min(1024, max(8, budget // max(per_row, 1)))
    tb -= tb % 8
    return int(max(tb, 8))


def normed_linear_forward(x, weight_v, weight_g, linear_bias, layer_bias,
                          running_mean, momentum=0.1):
    """x: (B, K); weight_v: (N, K) native dtype; g/biases/running_mean: (N,).

    Returns (out (B, N), new_running_mean (N,)).
    """
    batch, k = x.shape
    n = weight_v.shape[0]
    assert weight_v.shape[1] == k

    # Per-feature vectors merged into a single (4, N) f32 input (one DMA):
    # row 0 = g, row 1 = linear bias, row 2 = layer bias, row 3 = running_mean.
    params = jnp.stack([
        jnp.asarray(weight_g, jnp.float32).reshape(n),
        jnp.asarray(linear_bias, jnp.float32).reshape(n),
        jnp.asarray(layer_bias, jnp.float32).reshape(n),
        jnp.asarray(running_mean, jnp.float32).reshape(n),
    ], axis=0)

    out_dtype = x.dtype
    tile_b = _pick_batch_tile(batch, k, n,
                              jnp.dtype(x.dtype).itemsize,
                              jnp.dtype(out_dtype).itemsize)
    grid = (pl.cdiv(batch, tile_b),)

    y, stats = pl.pallas_call(
        functools.partial(_fwd_kernel, batch=batch, momentum=float(momentum)),
        grid=grid,
        in_specs=[
            pl.BlockSpec((tile_b, k), lambda i: (i, 0)),
            pl.BlockSpec((n, k), lambda i: (0, 0)),      # resident weights
            pl.BlockSpec((4, n), lambda i: (0, 0)),      # resident params
        ],
        out_specs=(
            pl.BlockSpec((tile_b, n), lambda i: (i, 0)),
            pl.BlockSpec((2, n), lambda i: (0, 0)),
        ),
        out_shape=(
            jax.ShapeDtypeStruct((batch, n), out_dtype),       # y = x@w.T + b
            jax.ShapeDtypeStruct((2, n), jnp.float32),         # [new_rm; shift]
        ),
        scratch_shapes=[
            pltpu.VMEM((1, n), jnp.float32),   # g / ||v||
            pltpu.VMEM((1, n), jnp.float32),   # column-sum of y
        ],
        compiler_params=pltpu.CompilerParams(
            dimension_semantics=("arbitrary",)),
    )(x, weight_v, params)

    out = pl.pallas_call(
        _center_kernel,
        grid=grid,
        in_specs=[
            pl.BlockSpec((tile_b, n), lambda i: (i, 0)),
            pl.BlockSpec((2, n), lambda i: (0, 0)),
        ],
        out_specs=pl.BlockSpec((tile_b, n), lambda i: (i, 0)),
        out_shape=jax.ShapeDtypeStruct((batch, n), out_dtype),
        compiler_params=pltpu.CompilerParams(
            dimension_semantics=("parallel",)),
    )(y, stats)

    return out, stats[0]


def _reference(x, weight_v, weight_g, linear_bias, layer_bias, running_mean,
               momentum=0.1):
    norm = jnp.sqrt(jnp.sum(weight_v * weight_v, axis=1, keepdims=True))
    w = weight_v * (weight_g.reshape(-1, 1) / norm)
    y = x @ w.T + linear_bias
    avg = jnp.mean(y, axis=0)
    out = y - avg + layer_bias
    new_rm = (1.0 - momentum) * running_mean + momentum * avg
    return out, new_rm


if __name__ == "__main__":
    batch, input_dim, out_dim = 8, 32, 128
    momentum = 0.1

    key = jax.random.PRNGKey(0)
    kx, kv, kg, kb = jax.random.split(key, 4)

    x = jax.random.normal(kx, (batch, input_dim), dtype=jnp.float32)
    weight_v = jax.random.normal(kv, (out_dim, input_dim), dtype=jnp.float32) * 0.1
    # weight_norm init: g = ||v|| per output row (matches PyTorch init)
    weight_g = jnp.sqrt(jnp.sum(weight_v * weight_v, axis=1))
    linear_bias = jax.random.normal(kb, (out_dim,), dtype=jnp.float32) * 0.01
    layer_bias = jnp.zeros((out_dim,), jnp.float32)        # reset_parameter()
    running_mean = jnp.zeros((out_dim,), jnp.float32)      # buffer init

    out, new_rm = normed_linear_forward(
        x, weight_v, weight_g, linear_bias, layer_bias, running_mean, momentum)
    jax.block_until_ready((out, new_rm))

    ref_out, ref_rm = _reference(
        x, weight_v, weight_g, linear_bias, layer_bias, running_mean, momentum)
    assert jnp.allclose(out, ref_out, atol=1e-5, rtol=1e-5)
    assert jnp.allclose(new_rm, ref_rm, atol=1e-5, rtol=1e-5)

    print("KERNEL_OK")
</pallas_src>

<mosaic_0001>
module attributes {stable_mosaic.version = 11 : i64} {
  func.func @_fwd_kernel(%arg0: i32, %arg1: memref<8x32xf32, #tpu.memory_space<vmem>>, %arg2: memref<128x32xf32, #tpu.memory_space<vmem>>, %arg3: memref<4x128xf32, #tpu.memory_space<vmem>>, %arg4: memref<8x128xf32, #tpu.memory_space<vmem>>, %arg5: memref<2x128xf32, #tpu.memory_space<vmem>>, %arg6: memref<1x128xf32, #tpu.memory_space<vmem>>, %arg7: memref<1x128xf32, #tpu.memory_space<vmem>>) attributes {dimension_semantics = [#tpu.dimension_semantics<arbitrary>], iteration_bounds = array<i64: 1>, scalar_prefetch = 0 : i64, scratch_operands = 2 : i64, tpu.core_type = #tpu.core_type<tc>, window_params = [{transform_indices = @transform_0, window_bounds = array<i64: 8, 32>}, {pipeline_mode = #tpu.pipeline_mode<synchronous>, transform_indices = @transform_1, window_bounds = array<i64: 128, 32>}, {pipeline_mode = #tpu.pipeline_mode<synchronous>, transform_indices = @transform_2, window_bounds = array<i64: 4, 128>}, {transform_indices = @transform_3, window_bounds = array<i64: 8, 128>}, {pipeline_mode = #tpu.pipeline_mode<synchronous>, transform_indices = @transform_4, window_bounds = array<i64: 2, 128>}]} {
    %c0_i32 = arith.constant 0 : i32
    %0 = arith.cmpi eq, %arg0, %c0_i32 : i32
    %1 = arith.extui %0 : i1 to i32
    %c0_i32_0 = arith.constant 0 : i32
    %2 = arith.cmpi ne, %1, %c0_i32_0 : i32
    scf.if %2 {
      %c0_18 = arith.constant 0 : index
      %c0_19 = arith.constant 0 : index
      %31 = vector.load %arg2[%c0_18, %c0_19] : memref<128x32xf32, #tpu.memory_space<vmem>>, vector<128x32xf32>
      %cst_20 = arith.constant 1.000000e+00 : f32
      %32 = vector.broadcast %cst_20 : f32 to vector<8x32xf32>
      %33 = arith.mulf %31, %31 : vector<128x32xf32>
      %cst_21 = arith.constant dense<0.000000e+00> : vector<8x128xf32>
      %34 = tpu.matmul %32, %33, %cst_21 {dimension_numbers = #tpu.dot_dimension_numbers<[1], [1], [0], [0], [0, 0, 1, 0], [], []>} : vector<8x32xf32>, vector<128x32xf32>, vector<8x128xf32> -> vector<8x128xf32>
      %c0_22 = arith.constant 0 : index
      %c0_23 = arith.constant 0 : index
      %35 = vector.load %arg3[%c0_22, %c0_23] : memref<4x128xf32, #tpu.memory_space<vmem>>, vector<1x128xf32>
      %36 = vector.extract_strided_slice %34 {offsets = [0, 0], sizes = [1, 128], strides = [1, 1]} : vector<8x128xf32> to vector<1x128xf32>
      %37 = math.rsqrt %36 : vector<1x128xf32>
      %38 = arith.mulf %35, %37 : vector<1x128xf32>
      %c0_24 = arith.constant 0 : index
      %c0_25 = arith.constant 0 : index
      %39 = vector.load %arg6[%c0_24, %c0_25] : memref<1x128xf32, #tpu.memory_space<vmem>>, vector<1x128xf32>
      tpu.vector_store %arg6[%c0_24, %c0_25], %38 {strides = array<i32>} : memref<1x128xf32, #tpu.memory_space<vmem>>, vector<1x128xf32>,
      %cst_26 = arith.constant 0.000000e+00 : f32
      %40 = vector.broadcast %cst_26 : f32 to vector<1x128xf32>
      %c0_27 = arith.constant 0 : index
      %c0_28 = arith.constant 0 : index
      %41 = vector.load %arg7[%c0_27, %c0_28] : memref<1x128xf32, #tpu.memory_space<vmem>>, vector<1x128xf32>
      tpu.vector_store %arg7[%c0_27, %c0_28], %40 {strides = array<i32>} : memref<1x128xf32, #tpu.memory_space<vmem>>, vector<1x128xf32>,
    } else {
    }
    %c0 = arith.constant 0 : index
    %c0_1 = arith.constant 0 : index
    %3 = vector.load %arg1[%c0, %c0_1] : memref<8x32xf32, #tpu.memory_space<vmem>>, vector<8x32xf32>
    %c0_2 = arith.constant 0 : index
    %c0_3 = arith.constant 0 : index
    %4 = vector.load %arg2[%c0_2, %c0_3] : memref<128x32xf32, #tpu.memory_space<vmem>>, vector<128x32xf32>
    %cst = arith.constant dense<0.000000e+00> : vector<8x128xf32>
    %5 = tpu.matmul %3, %4, %cst {dimension_numbers = #tpu.dot_dimension_numbers<[1], [1], [0], [0], [0, 0, 1, 0], [], []>} : vector<8x32xf32>, vector<128x32xf32>, vector<8x128xf32> -> vector<8x128xf32>
    %c0_4 = arith.constant 0 : index
    %c0_5 = arith.constant 0 : index
    %6 = vector.load %arg6[%c0_4, %c0_5] : memref<1x128xf32, #tpu.memory_space<vmem>>, vector<1x128xf32>
    %7 = vector.broadcast %6 : vector<1x128xf32> to vector<8x128xf32>
    %8 = arith.mulf %5, %7 : vector<8x128xf32>
    %c1 = arith.constant 1 : index
    %c0_6 = arith.constant 0 : index
    %9 = vector.load %arg3[%c1, %c0_6] : memref<4x128xf32, #tpu.memory_space<vmem>>, vector<1x128xf32>
    %10 = vector.broadcast %9 : vector<1x128xf32> to vector<8x128xf32>
    %11 = arith.addf %8, %10 : vector<8x128xf32>
    %c0_7 = arith.constant 0 : index
    %c0_8 = arith.constant 0 : index
    %12 = vector.load %arg4[%c0_7, %c0_8] : memref<8x128xf32, #tpu.memory_space<vmem>>, vector<8x128xf32>
    tpu.vector_store %arg4[%c0_7, %c0_8], %11 {strides = array<i32>} : memref<8x128xf32, #tpu.memory_space<vmem>>, vector<8x128xf32>,
    %13 = tpu.iota {dimensions = array<i32: 0>} : vector<8x1xi32>
    %c8_i32 = arith.constant 8 : i32
    %14 = arith.muli %arg0, %c8_i32 : i32
    %15 = vector.broadcast %14 : i32 to vector<8x1xi32>
    %16 = arith.addi %13, %15 : vector<8x1xi32>
    %c0_9 = arith.constant 0 : index
    %c0_10 = arith.constant 0 : index
    %17 = vector.load %arg7[%c0_9, %c0_10] : memref<1x128xf32, #tpu.memory_space<vmem>>, vector<1x128xf32>
    %c8_i32_11 = arith.constant 8 : i32
    %18 = vector.broadcast %c8_i32_11 : i32 to vector<8x1xi32>
    %19 = arith.cmpi slt, %16, %18 : vector<8x1xi32>
    %cst_12 = arith.constant 0.000000e+00 : f32
    %20 = vector.shape_cast %19 : vector<8x1xi1> to vector<8x1xi1>
    %21 = vector.broadcast %20 : vector<8x1xi1> to vector<8x128xi1>
    %22 = vector.broadcast %cst_12 : f32 to vector<8x128xf32>
    %23 = arith.select %21, %11, %22 : vector<8x128xi1>, vector<8x128xf32>
    %cst_13 = arith.constant dense<0.000000e+00> : vector<128xf32>
    %24 = vector.multi_reduction <add>, %23, %cst_13 [0] : vector<8x128xf32> to vector<128xf32>
    %25 = vector.shape_cast %24 : vector<128xf32> to vector<1x128xf32>
    %26 = arith.addf %17, %25 : vector<1x128xf32>
    %c0_14 = arith.constant 0 : index
    %c0_15 = arith.constant 0 : index
    %27 = vector.load %arg7[%c0_14, %c0_15] : memref<1x128xf32, #tpu.memory_space<vmem>>, vector<1x128xf32>
    tpu.vector_store %arg7[%c0_14, %c0_15], %26 {strides = array<i32>} : memref<1x128xf32, #tpu.memory_space<vmem>>, vector<1x128xf32>,
    %c0_i32_16 = arith.constant 0 : i32
    %28 = arith.cmpi eq, %arg0, %c0_i32_16 : i32
    %29 = arith.extui %28 : i1 to i32
    %c0_i32_17 = arith.constant 0 : i32
    %30 = arith.cmpi ne, %29, %c0_i32_17 : i32
    scf.if %30 {
      %c0_18 = arith.constant 0 : index
      %c0_19 = arith.constant 0 : index
      %31 = vector.load %arg7[%c0_18, %c0_19] : memref<1x128xf32, #tpu.memory_space<vmem>>, vector<1x128xf32>
      %cst_20 = arith.constant 1.250000e-01 : f32
      %32 = vector.broadcast %cst_20 : f32 to vector<1x128xf32>
      %33 = arith.mulf %31, %32 : vector<1x128xf32>
      %c3 = arith.constant 3 : index
      %c0_21 = arith.constant 0 : index
      %34 = vector.load %arg3[%c3, %c0_21] : memref<4x128xf32, #tpu.memory_space<vmem>>, vector<1x128xf32>
      %c2 = arith.constant 2 : index
      %c0_22 = arith.constant 0 : index
      %35 = vector.load %arg3[%c2, %c0_22] : memref<4x128xf32, #tpu.memory_space<vmem>>, vector<1x128xf32>
      %cst_23 = arith.constant 0.899999976 : f32
      %36 = vector.broadcast %cst_23 : f32 to vector<1x128xf32>
      %37 = arith.mulf %36, %34 : vector<1x128xf32>
      %cst_24 = arith.constant 1.000000e-01 : f32
      %38 = vector.broadcast %cst_24 : f32 to vector<1x128xf32>
      %39 = arith.mulf %38, %33 : vector<1x128xf32>
      %40 = arith.addf %37, %39 : vector<1x128xf32>
      %c0_25 = arith.constant 0 : index
      %c0_26 = arith.constant 0 : index
      %41 = vector.load %arg5[%c0_25, %c0_26] : memref<2x128xf32, #tpu.memory_space<vmem>>, vector<1x128xf32>
      tpu.vector_store %arg5[%c0_25, %c0_26], %40 {strides = array<i32>} : memref<2x128xf32, #tpu.memory_space<vmem>>, vector<1x128xf32>,
      %42 = arith.subf %35, %33 : vector<1x128xf32>
      %c1_27 = arith.constant 1 : index
      %c0_28 = arith.constant 0 : index
      %43 = vector.load %arg5[%c1_27, %c0_28] : memref<2x128xf32, #tpu.memory_space<vmem>>, vector<1x128xf32>
      tpu.vector_store %arg5[%c1_27, %c0_28], %42 {strides = array<i32>} : memref<2x128xf32, #tpu.memory_space<vmem>>, vector<1x128xf32>,
    } else {
    }
    return
  }
  func.func @transform_0(%arg0: i32) -> (i32, i32) {
    %c0_i32 = arith.constant 0 : i32
    %c0_i32_0 = arith.constant 0 : i32
    return %arg0, %c0_i32 : i32, i32
  }
  func.func @transform_1(%arg0: i32) -> (i32, i32) {
    %c0_i32 = arith.constant 0 : i32
    %c0_i32_0 = arith.constant 0 : i32
    %c0_i32_1 = arith.constant 0 : i32
    return %c0_i32, %c0_i32_0 : i32, i32
  }
  func.func @transform_2(%arg0: i32) -> (i32, i32) {
    %c0_i32 = arith.constant 0 : i32
    %c0_i32_0 = arith.constant 0 : i32
    %c0_i32_1 = arith.constant 0 : i32
    return %c0_i32, %c0_i32_0 : i32, i32
  }
  func.func @transform_3(%arg0: i32) -> (i32, i32) {
    %c0_i32 = arith.constant 0 : i32
    %c0_i32_0 = arith.constant 0 : i32
    return %arg0, %c0_i32 : i32, i32
  }
  func.func @transform_4(%arg0: i32) -> (i32, i32) {
    %c0_i32 = arith.constant 0 : i32
    %c0_i32_0 = arith.constant 0 : i32
    %c0_i32_1 = arith.constant 0 : i32
    return %c0_i32, %c0_i32_0 : i32, i32
  }
}

</mosaic_0001>

<bundles_post_ra>
// kernel: tpu_custom_call.1
= control target key start
LH: loop header
LB: loop body
LE: loop exit
PB: predicated region body
PF: predicated region fallthrough
CT: control target
= control target key end

     0   :  { %10 = vsyncpa [#allocation5], 0  ;;  %vm54_vm0 = vcmask 261120   ;;  %v654_v2 = vmov 0.0|0.0   ;;  %vm655_vm2 = vmmov 0   ;;  %v656_v9 = vmov 0.0   ;;  %s828_s0 = inlined_call_operand.vmem [shape: f32[8,32], index: 0, kind: input, shape index: {}]   ;;  %s829_s1 = inlined_call_operand.vmem [shape: f32[128,32], index: 1, kind: input, shape index: {}]   ;;  %s830_s2 = inlined_call_operand.vmem [shape: f32[4,128], index: 2, kind: input, shape index: {}]   ;;  %s831_s3 = inlined_call_operand.hbm [shape: f32[8,128], index: 3, kind: output, shape index: {0}]   ;;  %s832_s4 = inlined_call_operand.hbm [shape: f32[2,128], index: 4, kind: output, shape index: {1}]  }
   0x1   :  { %v22_v0 = vld [vmem:[%s829_s1] sm:$0xff]  ;;  %v23_v1 = vld [vmem:[%s829_s1 + $0x8] sm:$0xff]  ;;  %534 = vmatprep.subr.bf16.mxu0 %v654_v2  ;;  %566 = vmatprep.subr.bf16.mxu1 %v654_v2  ;;  %vm695_vm1 = vmpackc.low %vm54_vm0, %vm54_vm0  ;;  %180 = vst [vmem:[#allocation3] sm:$0x1] %v656_v9 }
   0x2   :  { %v38_v3 = vmul.f32 %v22_v0, %v22_v0  ;;  %v39_v4 = vmul.f32 %v23_v1, %v23_v1  ;;  %v24_v6 = vld [vmem:[%s829_s1 + $0x10] sm:$0xff]  ;;  %v25_v7 = vld [vmem:[%s829_s1 + $0x18] sm:$0xff]  ;;  %v567_v8 = vpack.c.bf16 %v23_v1, %v22_v0  ;;  %496 = vmatprep.mubr.msk.f32.mxu0 %vm655_vm2, %v656_v9  ;;  %531 = vmatprep.mubr.msk.f32.mxu1 %vm655_vm2, %v656_v9 }
   0x3   :  { %v40_v11 = vmul.f32 %v24_v6, %v24_v6  ;;  %v41_v12 = vmul.f32 %v25_v7, %v25_v7 }
   0x4   :  { %v535_v10 = vpack.c.bf16 %v39_v4, %v38_v3  ;;  %569 = vmatpush3.bf16.xpose.msk.msra.mxu1 %vm695_vm1, %v567_v8 }
   0x5   :  { %570 = vmatprep.subr.bf16.mxu1 %v654_v2 }
   0x6   :  { %537 = vmatpush3.bf16.xpose.msk.msra.mxu0 %vm695_vm1, %v535_v10 }
   0x7   :  { %538 = vmatprep.subr.bf16.mxu0 %v654_v2 }
   0x8   :  { %11 = vsyncpa [#allocation7], 0  ;;  %v571_v13 = vpack.c.bf16 %v25_v7, %v24_v6  ;;  %v539_v14 = vpack.c.bf16 %v41_v12, %v40_v11  ;;  %v26_v15 = vld [vmem:[%s829_s1 + $0x20] sm:$0xff]  ;;  %v27_v16 = vld [vmem:[%s829_s1 + $0x28] sm:$0xff]  ;;  %v657_v52 = vmov 1.0   ;;  %s658_s25 = smov [#allocation4]  }
   0x9   :  { %v42_v17 = vmul.f32 %v26_v15, %v26_v15  ;;  %v43_v18 = vmul.f32 %v27_v16, %v27_v16  ;;  %v575_v19 = vpack.c.bf16 %v27_v16, %v26_v15  ;;  %v28_v21 = vld [vmem:[%s829_s1 + $0x30] sm:$0xff]  ;;  %v29_v22 = vld [vmem:[%s829_s1 + $0x38] sm:$0xff]  ;;  %v30_v27 = vld [vmem:[%s829_s1 + $0x40] sm:$0xff]  ;;  %s372_s26 = sshll.u32 %s658_s25, 4  ;;  %s373_s26 = int_to_ptr.vmem [resolvable:$true] %s372_s26 }
   0xa   :  { %v44_v23 = vmul.f32 %v28_v21, %v28_v21  ;;  %v45_v24 = vmul.f32 %v29_v22, %v29_v22  ;;  %v579_v25 = vpack.c.bf16 %v29_v22, %v28_v21  ;;  %v31_v28 = vld [vmem:[%s829_s1 + $0x48] sm:$0xff]  ;;  %v46_v29 = vmul.f32 %v30_v27, %v30_v27  ;;  %v32_v33 = vld [vmem:[%s829_s1 + $0x50] sm:$0xff]  ;;  %v33_v34 = vld [vmem:[%s829_s1 + $0x58] sm:$0xff]  ;;  %s606_s27 = scalar_lea.vmem %s373_s26, 128  ;;  %p611_p1 = scmp.lt.s32.totalorder %s373_s26, %s373_s26 }
   0xb   :  { %v543_v20 = vpack.c.bf16 %v43_v18, %v42_v17  ;;  %v47_v30 = vmul.f32 %v31_v28, %v31_v28  ;;  %v583_v31 = vpack.c.bf16 %v31_v28, %v30_v27  ;;  %v48_v35 = vmul.f32 %v32_v33, %v32_v33  ;;  %v34_v39 = vld [vmem:[%s829_s1 + $0x60] sm:$0xff]  ;;  %v35_v40 = vld [vmem:[%s829_s1 + $0x68] sm:$0xff]  ;;  %v36_v45 = vld [vmem:[%s829_s1 + $0x70] sm:$0xff]  ;;  %p607_p0 = scmp.ne.s32.totalorder %s373_s26, %s606_s27  ;;  %p612_p2 = scmp.lt.s32.totalorder %s606_s27, %s606_s27 }
   0xc   :  { %573 = vmatpush3.bf16.xpose.msk.msra.mxu1 %vm695_vm1, %v571_v13  ;;  %v547_v26 = vpack.c.bf16 %v45_v24, %v44_v23  ;;  %v49_v36 = vmul.f32 %v33_v34, %v33_v34  ;;  %v587_v37 = vpack.c.bf16 %v33_v34, %v32_v33  ;;  %v50_v41 = vmul.f32 %v34_v39, %v34_v39  ;;  %v37_v46 = vld [vmem:[%s829_s1 + $0x78] sm:$0xff]  ;;  %v181_v51 = vld [vmem:[%s828_s0] sm:$0xff] }
   0xd   :  { %574 = vmatprep.subr.bf16.mxu1 %v654_v2  ;;  %v551_v32 = vpack.c.bf16 %v47_v30, %v46_v29  ;;  %v51_v42 = vmul.f32 %v35_v40, %v35_v40  ;;  %v591_v43 = vpack.c.bf16 %v35_v40, %v34_v39  ;;  %v52_v47 = vmul.f32 %v36_v45, %v36_v45  ;;  %v176_v57 = vld [vmem:[%s830_s2] sm:$0x1]  ;;  %v429_v61 = vld [vmem:[%s830_s2 + $0x1] ss:$0 sm:$0xff]  ;;  %p613_p3 = por %p612_p2, %p611_p1 }
   0xe   :  { %541 = vmatpush3.bf16.xpose.msk.msra.mxu0 %vm695_vm1, %v539_v14  ;;  %v555_v38 = vpack.c.bf16 %v49_v36, %v48_v35  ;;  %v53_v48 = vmul.f32 %v37_v46, %v37_v46  ;;  %v595_v49 = vpack.c.bf16 %v37_v46, %v36_v45 }
   0xf   :  { %542 = vmatprep.subr.bf16.mxu0 %v654_v2  ;;  %v559_v44 = vpack.c.bf16 %v51_v42, %v50_v41  ;;  %p614_p4 = pnand %p613_p3, %p607_p0 }
  0x10   :  { %v563_v50 = vpack.c.bf16 %v53_v48, %v52_v47 }
  0x14   :  { %577 = vmatpush3.bf16.xpose.msk.msra.mxu1 %vm695_vm1, %v575_v19 }
  0x15   :  { %578 = vmatprep.subr.bf16.mxu1 %v654_v2 }
  0x16   :  { %545 = vmatpush3.bf16.xpose.msk.msra.mxu0 %vm695_vm1, %v543_v20 }
  0x17   :  { %546 = vmatprep.subr.bf16.mxu0 %v654_v2 }
  0x1c   :  { %581 = vmatpush3.bf16.xpose.msk.msra.mxu1 %vm695_vm1, %v579_v25 }
  0x1d   :  { %582 = vmatprep.subr.bf16.mxu1 %v654_v2 }
  0x1e   :  { %549 = vmatpush3.bf16.xpose.msk.msra.mxu0 %vm695_vm1, %v547_v26 }
  0x1f   :  { %550 = vmatprep.subr.bf16.mxu0 %v654_v2 }
  0x24   :  { %585 = vmatpush3.bf16.xpose.msk.msra.mxu1 %vm695_vm1, %v583_v31 }
  0x25   :  { %586 = vmatprep.subr.bf16.mxu1 %v654_v2 }
  0x26   :  { %553 = vmatpush3.bf16.xpose.msk.msra.mxu0 %vm695_vm1, %v551_v32 }
  0x27   :  { %554 = vmatprep.subr.bf16.mxu0 %v654_v2 }
  0x2c   :  { %589 = vmatpush3.bf16.xpose.msk.msra.mxu1 %vm695_vm1, %v587_v37 }
  0x2d   :  { %590 = vmatprep.subr.bf16.mxu1 %v654_v2 }
  0x2e   :  { %557 = vmatpush3.bf16.xpose.msk.msra.mxu0 %vm695_vm1, %v555_v38 }
  0x2f   :  { %558 = vmatprep.subr.bf16.mxu0 %v654_v2 }
  0x34   :  { %593 = vmatpush3.bf16.xpose.msk.msra.mxu1 %vm695_vm1, %v591_v43 }
  0x35   :  { %594 = vmatprep.subr.bf16.mxu1 %v654_v2 }
  0x36   :  { %561 = vmatpush3.bf16.xpose.msk.msra.mxu0 %vm695_vm1, %v559_v44 }
  0x37   :  { %562 = vmatprep.subr.bf16.mxu0 %v654_v2 }
  0x3c   :  { %597 = vmatpush3.bf16.xpose.msk.msra.mxu1 %vm695_vm1, %v595_v49 }
  0x3e   :  { %565 = vmatpush3.bf16.xpose.msk.msra.mxu0 %vm695_vm1, %v563_v50 }
  0x43   :  { %532 = vmatmul.mubr.msk.f32.vlgmr.msra.gmra.mrb[0].mxu1 %vm54_vm0, %v181_v51 }
  0x45   :  { %497 = vmatmul.mubr.msk.f32.vlgmr.msra.gmra.mrb[0].mxu0 %vm54_vm0, %v657_v52 }
 0x116   :  { %v316_v53 = vpop.f32.mrb[0].mxu1 }
 0x117   :  { %v533_v55 = vpop.f32.mrb[1].mxu1 }
 0x118   :  { %v172_v54 = vpop.f32.mrb[0].mxu0 }
 0x119   :  { %604 = vrsqrt.f32 %v172_v54  ;;  %v498_v56 = vpop.f32.mrb[1].mxu0 }
 0x123   :  { %v605_v58 = vpop.eup %604 }
 0x124   :  { %v178_v59 = vmul.f32 %v605_v58, %v176_v57 }
 0x126   :  { %179 = vst [vmem:[#allocation2] sm:$0x1] %v178_v59 }
 0x12d   :  { %v428_v60 = vld [vmem:[#allocation2] ss:$0 sm:$0xff] }
 0x12e   :  { %v327_v62 = vmul.f32 %v428_v60, %v316_v53 }
 0x130   :  { %v333_v63 = vadd.f32 %v429_v61, %v327_v62 }
 0x132   :  { %v345_v0 = vrot.slane %v333_v63, 4  ;;  %334 = vst [vmem:[#allocation4] sm:$0xff] %v333_v63 }
 0x133   :  { %617 = shalt.err (!%p614_p4)
}
 0x134   :  { %s618_s30 = scalar_lea.hbm %s831_s3, 128 }
 0x135   :  { %p619_p5 = scmp.ne.s32.totalorder %s831_s3, %s618_s30  ;;  %p622_p6 = scmp.lt.u32.totalorder %s618_s30, %s831_s3 }
 0x137   :  { %p624_p7 = pnand %p622_p6, %p619_p5 }
 0x139   :  { %627 = shalt.err (!%p624_p7)
}
 0x13a   :  { %375 = dma.vmem_to_hbm [thread:$0]  %s373_s26, 128, %s831_s3, [#allocation5]   ;;  %v346_v1 = vadd.f32 %v345_v0, %v333_v63  ;;  %v340_v5 = vld [vmem:[#allocation3] sm:$0x1]  ;;  %v358_v8 = vld [vmem:[%s830_s2 + $0x3] sm:$0x1] }
 0x13b   :  { %v359_v10 = vld [vmem:[%s830_s2 + $0x2] sm:$0x1]  ;;  %v360_v12 = vmul.f32 0.9, %v358_v8  ;;  %s659_s3 = smov [#allocation6]  }
 0x13c   :  { %v347_v2 = vrot.slane %v346_v1, 2  ;;  %s382_s15 = sshll.u32 %s659_s3, 4  ;;  %s383_s15 = int_to_ptr.vmem [resolvable:$true] %s382_s15 }
 0x13d   :  { %s628_s16 = scalar_lea.vmem %s383_s15, 32  ;;  %p633_p9 = scmp.lt.s32.totalorder %s383_s15, %s383_s15 }
 0x13e   :  { %v348_v3 = vadd.f32 %v347_v2, %v346_v1  ;;  %p629_p8 = scmp.ne.s32.totalorder %s383_s15, %s628_s16  ;;  %p634_p10 = scmp.lt.s32.totalorder %s628_s16, %s628_s16 }
 0x140   :  { %v349_v4 = vrot.slane %v348_v3, 1  ;;  %p635_p11 = por %p634_p10, %p633_p9 }
 0x142   :  { %v350_v6 = vadd.f32 %v349_v4, %v348_v3  ;;  %p636_p12 = pnand %p635_p11, %p629_p8 }
 0x144   :  { %v351_v7 = vadd.f32 %v350_v6, %v340_v5 }
 0x146   :  { %352 = vst [vmem:[#allocation3] sm:$0x1] %v351_v7 }
 0x14d   :  { %v356_v9 = vld [vmem:[#allocation3] sm:$0x1] }
 0x14e   :  { %v357_v11 = vmul.f32 0.125, %v356_v9 }
 0x150   :  { %v361_v13 = vmul.f32 0.1, %v357_v11  ;;  %v364_v14 = vsub.f32 %v359_v10, %v357_v11 }
 0x152   :  { %v362_v15 = vadd.f32 %v361_v13, %v360_v12  ;;  %365 = vst [vmem:[#allocation6 + $0x1] sm:$0x1] %v364_v14 }
 0x154   :  { %363 = vst [vmem:[#allocation6] sm:$0x1] %v362_v15 }
 0x155   :  { %639 = shalt.err (!%p636_p12)
}
 0x156   :  { %s640_s2 = scalar_lea.hbm %s832_s4, 32 }
 0x157   :  { %p641_p13 = scmp.ne.s32.totalorder %s832_s4, %s640_s2  ;;  %p644_p0 = scmp.lt.u32.totalorder %s640_s2, %s832_s4 }
 0x159   :  { %p646_p1 = pnand %p644_p0, %p641_p13 }
 0x15b   :  { %649 = shalt.err (!%p646_p1)
}
 0x15c   :  { %385 = dma.vmem_to_hbm [thread:$0]  %s383_s15, 32, %s832_s4, [#allocation7]  }
 0x15d   :  { %650 = dma.done.wait [#allocation5], 128  }
 0x15e   :  { %651 = vsyncadd [#allocation5], 4294967168 }
 0x15f   :  { %652 = dma.done.wait [#allocation7], 32  }
 0x160   :  { %653 = vsyncadd [#allocation7], 4294967264 }
 0x161   :  { %392 = vsyncpa [#allocation5], 1 }
 0x162   :  { %393 = vsyncpa [#allocation7], 1 }

</bundles_post_ra>
